<compile_context>
chip_gen: v5e
topology: v5e:2x2
jax: 0.10.0
libtpu: 0.0.40
codegen_flags: <defaults>
</compile_context>

<pallas_src>
import functools

import jax
import jax.numpy as jnp
from jax.experimental import pallas as pl
from jax.experimental.pallas import tpu as pltpu


def _round_up(x, m):
    return (x + m - 1) // m * m


# ----------------------------------------------------------------------------
# Kernel 1: Chebyshev supports  (K, N, N) = stack([I, A, 2A*prev - prev2, ...])
# with A = softmax(relu(E @ E^T), axis=1).  Runs once per forward.
# ----------------------------------------------------------------------------
def _supports_kernel(e_ref, out_ref):
    E = e_ref[...].astype(jnp.float32)                     # (N, D)
    N = E.shape[0]
    K = out_ref.shape[0]

    a = jax.lax.dot_general(E, E, (((1,), (1,)), ((), ())),
                            preferred_element_type=jnp.float32)   # (N, N)
    a = jnp.maximum(a, 0.0)
    a = a - jnp.max(a, axis=1, keepdims=True)
    a = jnp.exp(a)
    a = a * pl.reciprocal(jnp.sum(a, axis=1, keepdims=True), approx=True)

    row = jax.lax.broadcasted_iota(jnp.int32, (N, N), 0)
    col = jax.lax.broadcasted_iota(jnp.int32, (N, N), 1)
    eye = (row == col).astype(jnp.float32)

    sup = [eye, a]
    for _ in range(2, K):
        sup.append(2.0 * jnp.dot(a, sup[-1], preferred_element_type=jnp.float32)
                   - sup[-2])
    for k in range(K):
        out_ref[k] = sup[k]


def _compute_supports(node_emb, cheb_k):
    N, D = node_emb.shape
    return pl.pallas_call(
        _supports_kernel,
        out_shape=jax.ShapeDtypeStruct((cheb_k, N, N), jnp.float32),
        in_specs=[pl.BlockSpec((N, D), lambda: (0, 0))],
        out_specs=pl.BlockSpec((cheb_k, N, N), lambda: (0, 0, 0)),
    )(node_emb)


# ----------------------------------------------------------------------------
# Kernel 2: recurrent AGCRN cell.  Grid = (batch_tiles, T); state in VMEM.
# Only the state-dependent half of the gconv is computed here; the x-dependent
# pre-activations (gzx / grx / ux, biases included) are precomputed outside.
# ----------------------------------------------------------------------------
def _agcrn_cell_kernel(gzx_ref, grx_ref, ux_ref, h0_ref, a_ref,
                       wz_ref, wr_ref, wu_ref, out_ref,
                       state_sc, sg_sc, zs_sc,
                       *, cheb_k, batch_tile, last_only):
    t = pl.program_id(1)

    @pl.when(t == 0)
    def _():
        state_sc[...] = h0_ref[...].astype(jnp.float32)

    s = state_sc[...]                                      # (N, tb, Hp) f32

    def per_node_mm(act, w_ref, k):
        # act: (N, tb, Hp); w_ref[k]: (N, Hp, Hp) -> (N, tb, Hp) on the MXU.
        return jnp.einsum('nbh,nho->nbo', act, w_ref[k],
                          preferred_element_type=jnp.float32)

    def cheb_apply(src_ref, k):
        # Apply non-identity support k (>=1): per batch column a 2-D matmul
        # (N, N) @ (N, Hp); results assembled in the sg scratch.
        for b in range(batch_tile):
            sg_sc[:, b, :] = jnp.dot(a_ref[k - 1], src_ref[:, b, :],
                                     preferred_element_type=jnp.float32)
        return sg_sc[...]

    # ---- gate: z, r ---------------------------------------------------------
    z_pre = gzx_ref[...].astype(jnp.float32) + per_node_mm(s, wz_ref, 0)
    r_pre = grx_ref[...].astype(jnp.float32) + per_node_mm(s, wr_ref, 0)
    for k in range(1, cheb_k):
        sg = cheb_apply(state_sc, k)
        z_pre = z_pre + per_node_mm(sg, wz_ref, k)
        r_pre = r_pre + per_node_mm(sg, wr_ref, k)
    z = jax.nn.sigmoid(z_pre)
    r = jax.nn.sigmoid(r_pre)

    # ---- candidate ----------------------------------------------------------
    zs_sc[...] = z * s
    hc_pre = ux_ref[...].astype(jnp.float32) + per_node_mm(zs_sc[...], wu_ref, 0)
    for k in range(1, cheb_k):
        zsg = cheb_apply(zs_sc, k)
        hc_pre = hc_pre + per_node_mm(zsg, wu_ref, k)
    hc = jnp.tanh(hc_pre)

    h = r * s + (1.0 - r) * hc
    state_sc[...] = h

    if last_only:
        @pl.when(t == pl.num_programs(1) - 1)
        def _():
            out_ref[...] = h.astype(out_ref.dtype)
    else:
        out_ref[...] = h.astype(out_ref.dtype)


def _run_agcrn_layer(gzx, grx, ux, h0p, a_sup, wz, wr, wu,
                     *, cheb_k, batch_tile, last_only):
    T, N, B, Hp = gzx.shape
    tb = batch_tile
    nb = B // tb
    Km1 = a_sup.shape[0]

    def seq_spec():
        return pl.BlockSpec((None, N, tb, Hp), lambda b, t: (t, 0, b, 0))

    def const_spec(shape):
        idx = lambda b, t, _n=len(shape): (0,) * _n
        if hasattr(pl, "Buffered"):
            try:
                # Grid-invariant: single-buffer to halve its VMEM footprint.
                return pl.BlockSpec(shape, idx, pipeline_mode=pl.Buffered(1))
            except (TypeError, ValueError):
                pass
        return pl.BlockSpec(shape, idx)

    in_specs = [
        seq_spec(),                                         # gzx
        seq_spec(),                                         # grx
        seq_spec(),                                         # ux
        pl.BlockSpec((N, tb, Hp), lambda b, t: (0, b, 0)),  # h0
        const_spec((Km1, N, N)),                            # non-identity supports
        const_spec((cheb_k, N, Hp, Hp)),                    # wz (state part)
        const_spec((cheb_k, N, Hp, Hp)),                    # wr (state part)
        const_spec((cheb_k, N, Hp, Hp)),                    # wu (state part)
    ]
    if last_only:
        out_shape = jax.ShapeDtypeStruct((N, B, Hp), jnp.float32)
        out_specs = pl.BlockSpec((N, tb, Hp), lambda b, t: (0, b, 0))
    else:
        out_shape = jax.ShapeDtypeStruct((T, N, B, Hp), jnp.float32)
        out_specs = pl.BlockSpec((None, N, tb, Hp), lambda b, t: (t, 0, b, 0))

    # Explicit scoped-VMEM budget: streamed blocks (double-buffered), weights,
    # scratch, plus headroom; clamped to a range that is safe on v5e/v6e/v7x.
    blk = N * tb * Hp * 4
    wbytes = 3 * cheb_k * N * Hp * Hp * 4 + Km1 * N * N * 4
    est = 12 * blk + 2 * wbytes + (8 << 20)
    vmem_bytes = int(min(max(est, 32 << 20), 48 << 20))

    kernel = functools.partial(_agcrn_cell_kernel, cheb_k=cheb_k,
                               batch_tile=tb, last_only=last_only)
    return pl.pallas_call(
        kernel,
        out_shape=out_shape,
        grid_spec=pltpu.PrefetchScalarGridSpec(
            num_scalar_prefetch=0,
            grid=(nb, T),
            in_specs=in_specs,
            out_specs=out_specs,
            scratch_shapes=[pltpu.VMEM((N, tb, Hp), jnp.float32),   # state
                            pltpu.VMEM((N, tb, Hp), jnp.float32),   # cheb tmp
                            pltpu.VMEM((N, tb, Hp), jnp.float32)],  # z*state
        ),
        compiler_params=pltpu.CompilerParams(
            dimension_semantics=("parallel", "arbitrary"),
            vmem_limit_bytes=vmem_bytes),
    )(gzx, grx, ux, h0p, a_sup, wz, wr, wu)


# ----------------------------------------------------------------------------
# Glue: parameter prep + state-independent (x-part) pre-activations.
# ----------------------------------------------------------------------------
def _prepare_layer_params(node_emb, p, dim_in, hidden_dim, cheb_k, hp):
    H = hidden_dim
    Wg = jnp.einsum('nd,dkio->nkio', node_emb, p['gate_w_pool'])    # (N,K,C,2H)
    bg = node_emb @ p['gate_b_pool']                                # (N, 2H)
    Wu = jnp.einsum('nd,dkio->nkio', node_emb, p['update_w_pool'])  # (N,K,C,H)
    bu = node_emb @ p['update_b_pool']                              # (N, H)

    # Linearity split: x-part vs state-part of the gconv input channels.
    Wg_x, Wg_s = Wg[:, :, :dim_in, :], Wg[:, :, dim_in:, :]
    Wu_x, Wu_s = Wu[:, :, :dim_in, :], Wu[:, :, dim_in:, :]
    # Split the gate output into its z / r halves (no in-kernel slicing).
    Wgz_s, Wgr_s = Wg_s[..., :H], Wg_s[..., H:]

    def pad_state_w(w):      # (N, K, H, O) -> (K, N, Hp, Hp), zero padded
        w = jnp.transpose(w, (1, 0, 2, 3))
        return jnp.pad(w, ((0, 0), (0, 0),
                           (0, hp - w.shape[2]), (0, hp - w.shape[3])))

    return Wg_x, bg, Wu_x, bu, pad_state_w(Wgz_s), pad_state_w(Wgr_s), \
        pad_state_w(Wu_s)


def _precompute_input_terms(cur, supports, Wg_x, bg, Wu_x, bu, hidden_dim, hp):
    # cur: (T, N, B, C); supports: (K, N, N).  Biases live in the x-part.
    H = hidden_dim
    xg = jnp.einsum('knm,tmbc->tnbkc', supports, cur)
    gate_x = jnp.einsum('tnbkc,nkco->tnbo', xg, Wg_x) + bg[None, :, None, :]
    upd_x = jnp.einsum('tnbkc,nkco->tnbo', xg, Wu_x) + bu[None, :, None, :]
    pad = ((0, 0), (0, 0), (0, 0), (0, hp - H))
    return (jnp.pad(gate_x[..., :H], pad),      # z pre-activation (x part)
            jnp.pad(gate_x[..., H:], pad),      # r pre-activation (x part)
            jnp.pad(upd_x, pad))                # candidate pre-act (x part)


def init_params(key, num_layers, feature_dim, hidden_dim, cheb_k, embed_dim):
    params = []
    scale = 0.1
    for i in range(num_layers):
        dim_in = feature_dim if i == 0 else hidden_dim
        c = dim_in + hidden_dim
        key, k0, k1, k2, k3 = jax.random.split(key, 5)
        params.append(dict(
            gate_w_pool=scale * jax.random.normal(
                k0, (embed_dim, cheb_k, c, 2 * hidden_dim), jnp.float32),
            gate_b_pool=scale * jax.random.normal(
                k1, (embed_dim, 2 * hidden_dim), jnp.float32),
            update_w_pool=scale * jax.random.normal(
                k2, (embed_dim, cheb_k, c, hidden_dim), jnp.float32),
            update_b_pool=scale * jax.random.normal(
                k3, (embed_dim, hidden_dim), jnp.float32),
        ))
    return params


def avwdcrnn_forward(x, init_state, node_emb, params, hidden_dim, cheb_k,
                     batch_tile=None):
    """x: (B, T, N, Din), init_state: (L, B, N, H) -> (B, 1, N, H)."""
    B, T, N, Din = x.shape
    H = hidden_dim
    assert cheb_k >= 2, "cheb_order >= 2 expected (module default is 2)"
    hp = _round_up(H, 128)
    if batch_tile is None:
        batch_tile = 8 if (B % 8 == 0 and B > 8) else B
    assert B % batch_tile == 0
    assert batch_tile == B or batch_tile % 8 == 0

    supports = _compute_supports(node_emb, cheb_k)         # (K, N, N)
    a_sup = supports[1:]                                   # non-identity only

    cur = jnp.transpose(x, (1, 2, 0, 3))                   # (T, N, B, Din)
    num_layers = len(params)
    out = None
    for i, p in enumerate(params):
        dim_in = Din if i == 0 else H
        Wg_x, bg, Wu_x, bu, wz, wr, wu = _prepare_layer_params(
            node_emb, p, dim_in, H, cheb_k, hp)
        gzx, grx, ux = _precompute_input_terms(cur, supports, Wg_x, bg,
                                               Wu_x, bu, H, hp)
        h0 = jnp.transpose(init_state[i], (1, 0, 2))       # (N, B, H)
        h0p = jnp.pad(h0, ((0, 0), (0, 0), (0, hp - H)))
        last = (i == num_layers - 1)
        out = _run_agcrn_layer(gzx, grx, ux, h0p, a_sup, wz, wr, wu,
                               cheb_k=cheb_k, batch_tile=batch_tile,
                               last_only=last)
        if not last:
            cur = out[..., :H]                             # (T, N, B, H)

    # last layer output: (N, B, Hp) holding only h_{T-1}
    h_last = jnp.transpose(out[:, :, :H], (1, 0, 2))       # (B, N, H)
    return h_last[:, None, :, :]


# ----------------------------------------------------------------------------
# Pure-JAX reference (mirrors the PyTorch code 1:1) for validation.
# ----------------------------------------------------------------------------
def _ref_avwgcn(x, node_emb, w_pool, b_pool, cheb_k):
    N = node_emb.shape[0]
    s = jax.nn.softmax(jax.nn.relu(node_emb @ node_emb.T), axis=1)
    sup = [jnp.eye(N, dtype=jnp.float32), s]
    for _ in range(2, cheb_k):
        sup.append(2 * s @ sup[-1] - sup[-2])
    supports = jnp.stack(sup, axis=0)
    weights = jnp.einsum('nd,dkio->nkio', node_emb, w_pool)
    bias = node_emb @ b_pool
    x_g = jnp.einsum('knm,bmc->bknc', supports, x)
    x_g = jnp.transpose(x_g, (0, 2, 1, 3))
    return jnp.einsum('bnki,nkio->bno', x_g, weights) + bias


def _ref_cell(x, state, node_emb, p, hidden_dim, cheb_k):
    ins = jnp.concatenate([x, state], axis=-1)
    zr = jax.nn.sigmoid(
        _ref_avwgcn(ins, node_emb, p['gate_w_pool'], p['gate_b_pool'], cheb_k))
    z, r = zr[..., :hidden_dim], zr[..., hidden_dim:]
    cand = jnp.concatenate([x, z * state], axis=-1)
    hc = jnp.tanh(
        _ref_avwgcn(cand, node_emb, p['update_w_pool'], p['update_b_pool'],
                    cheb_k))
    return r * state + (1 - r) * hc


def _ref_forward(x, init_state, node_emb, params, hidden_dim, cheb_k):
    current = x
    for i, p in enumerate(params):
        state = init_state[i]
        outs = []
        for t in range(x.shape[1]):
            state = _ref_cell(current[:, t], state, node_emb, p,
                              hidden_dim, cheb_k)
            outs.append(state)
        current = jnp.stack(outs, axis=1)
    return current[:, -1:, :, :]


if __name__ == "__main__":
    B, T, N = 16, 6, 16
    feature_dim, hidden_dim, embed_dim = 2, 32, 10
    num_layers, cheb_k = 2, 2

    key = jax.random.PRNGKey(0)
    kx, ke, kp = jax.random.split(key, 3)
    x = jax.random.normal(kx, (B, T, N, feature_dim), jnp.float32)
    node_emb = jax.random.normal(ke, (N, embed_dim), jnp.float32)
    # AVWDCRNN.init_hidden -> zeros, shape (num_layers, B, N, H)
    init_state = jnp.zeros((num_layers, B, N, hidden_dim), jnp.float32)
    params = init_params(kp, num_layers, feature_dim, hidden_dim,
                         cheb_k, embed_dim)

    out = avwdcrnn_forward(x, init_state, node_emb, params,
                           hidden_dim, cheb_k, batch_tile=8)
    out = jax.block_until_ready(out)
    assert out.shape == (B, 1, N, hidden_dim), out.shape

    ref = _ref_forward(x, init_state, node_emb, params, hidden_dim, cheb_k)
    err = float(jnp.max(jnp.abs(out - ref)))
    if err > 5e-2:
        raise AssertionError(f"mismatch vs reference: max abs err {err}")

    print("KERNEL_OK")
</pallas_src>

<mosaic_0001>
module attributes {stable_mosaic.version = 11 : i64} {
  func.func @_supports_kernel(%arg0: memref<16x10xf32, #tpu.memory_space<vmem>>, %arg1: memref<2x16x16xf32, #tpu.memory_space<vmem>>) attributes {dimension_semantics = [], scalar_prefetch = 0 : i64, scratch_operands = 0 : i64, tpu.core_type = #tpu.core_type<tc>} {
    %c0 = arith.constant 0 : index
    %c0_0 = arith.constant 0 : index
    %0 = vector.load %arg0[%c0, %c0_0] : memref<16x10xf32, #tpu.memory_space<vmem>>, vector<16x10xf32>
    %cst = arith.constant dense<0.000000e+00> : vector<16x16xf32>
    %1 = tpu.matmul %0, %0, %cst {dimension_numbers = #tpu.dot_dimension_numbers<[1], [1], [0], [0], [0, 0, 1, 0], [], []>} : vector<16x10xf32>, vector<16x10xf32>, vector<16x16xf32> -> vector<16x16xf32>
    %cst_1 = arith.constant 0.000000e+00 : f32
    %2 = vector.broadcast %cst_1 : f32 to vector<16x16xf32>
    %3 = arith.maximumf %1, %2 : vector<16x16xf32>
    %cst_2 = arith.constant dense<0xFF800000> : vector<16xf32>
    %4 = vector.multi_reduction <maximumf>, %3, %cst_2 [1] : vector<16x16xf32> to vector<16xf32>
    %5 = vector.shape_cast %4 : vector<16xf32> to vector<16x1xf32>
    %6 = vector.broadcast %5 : vector<16x1xf32> to vector<16x16xf32>
    %7 = arith.subf %3, %6 : vector<16x16xf32>
    %8 = math.exp %7 : vector<16x16xf32>
    %cst_3 = arith.constant dense<0.000000e+00> : vector<16xf32>
    %9 = vector.multi_reduction <add>, %8, %cst_3 [1] : vector<16x16xf32> to vector<16xf32>
    %10 = vector.shape_cast %9 : vector<16xf32> to vector<16x1xf32>
    %11 = tpu.reciprocal %10 {approx = true} : vector<16x1xf32> -> vector<16x1xf32>
    %12 = vector.broadcast %11 : vector<16x1xf32> to vector<16x16xf32>
    %13 = arith.mulf %8, %12 : vector<16x16xf32>
    %14 = tpu.iota {dimensions = array<i32: 0>} : vector<16x16xi32>
    %15 = tpu.iota {dimensions = array<i32: 1>} : vector<16x16xi32>
    %16 = arith.cmpi eq, %14, %15 : vector<16x16xi32>
    %17 = arith.extui %16 : vector<16x16xi1> to vector<16x16xi32>
    %18 = arith.sitofp %17 : vector<16x16xi32> to vector<16x16xf32>
    %c0_4 = arith.constant 0 : index
    %c0_5 = arith.constant 0 : index
    %c0_6 = arith.constant 0 : index
    %19 = vector.load %arg1[%c0_4, %c0_5, %c0_6] : memref<2x16x16xf32, #tpu.memory_space<vmem>>, vector<1x16x16xf32>
    %20 = vector.shape_cast %19 : vector<1x16x16xf32> to vector<16x16xf32>
    %21 = vector.shape_cast %18 : vector<16x16xf32> to vector<1x16x16xf32>
    tpu.vector_store %arg1[%c0_4, %c0_5, %c0_6], %21 {strides = array<i32>} : memref<2x16x16xf32, #tpu.memory_space<vmem>>, vector<1x16x16xf32>,
    %c1 = arith.constant 1 : index
    %c0_7 = arith.constant 0 : index
    %c0_8 = arith.constant 0 : index
    %22 = vector.load %arg1[%c1, %c0_7, %c0_8] : memref<2x16x16xf32, #tpu.memory_space<vmem>>, vector<1x16x16xf32>
    %23 = vector.shape_cast %22 : vector<1x16x16xf32> to vector<16x16xf32>
    %24 = vector.shape_cast %13 : vector<16x16xf32> to vector<1x16x16xf32>
    tpu.vector_store %arg1[%c1, %c0_7, %c0_8], %24 {strides = array<i32>} : memref<2x16x16xf32, #tpu.memory_space<vmem>>, vector<1x16x16xf32>,
    return
  }
}

</mosaic_0001>

<bundles_post_ra>
// kernel: tpu_custom_call.1
= control target key start
LH: loop header
LB: loop body
LE: loop exit
PB: predicated region body
PF: predicated region fallthrough
CT: control target
= control target key end

     0   :  { %6 = vsyncpa [#allocation3], 0  ;;  %s225_s0 = inlined_call_operand.hbm [shape: f32[16,10], index: 0, kind: input, shape index: {}]   ;;  %s226_s1 = inlined_call_operand.hbm [shape: f32[2,16,16], index: 1, kind: output, shape index: {}]  }
   0x1   :  { %7 = vsyncpa [#allocation4], 0  ;;  %s12_s8 = sshll.u32 %s225_s0, 4  ;;  %s190_s9 = smov [#allocation2]   ;;  %s13_s8 = int_to_ptr.hbm [resolvable:$true] %s12_s8 }
   0x2   :  { %s14_s10 = sshll.u32 %s190_s9, 4  ;;  %s191_s11 = smov 128   ;;  %s15_s10 = int_to_ptr.vmem [resolvable:$true] %s14_s10 }
   0x3   :  { %s192_s12 = smov 8  }
   0x4   :  { %20 = dma.hbm_to_vmem [thread:$0]  %s13_s8, 256, %s15_s10, [#allocation3], %s191_s11, %s191_s11, %s192_s12  }
   0x5   :  { %186 = dma.done.wait [#allocation3], 256  }
   0x6   :  { %187 = vsyncadd [#allocation3], 4294967040  ;;  %vm27_vm0 = vcmask 80896   ;;  %v26_v0 = vld [vmem:[#allocation2 + $0x8] sm:$0xff]  ;;  %v25_v1 = vld [vmem:[#allocation2] sm:$0xff]  ;;  %vm59_vm1 = vcmask 130048   ;;  %v82_v18 = vlaneseq }
   0x7   :  { %117 = vmatpush.xpose.msk.msra.mxu0 %vm27_vm0, %v26_v0  ;;  %123 = vmatpush.xpose.msk.msra.mxu1 %vm27_vm0, %v26_v0  ;;  %v193_v22 = vmov 0.0   ;;  %s194_s0 = smov [#allocation5]   ;;  %s104_s16 = sshll.u32 %s226_s1, 4  ;;  %s105_s16 = int_to_ptr.hbm [resolvable:$true] %s104_s16 }
   0x8   :  { %v83_v19 = vshrl.u32 %v82_v18, 7  ;;  %v86_v21 = vand.u32 127, %v82_v18  ;;  %s102_s13 = sshll.u32 %s194_s0, 4  ;;  %s103_s13 = int_to_ptr.vmem [resolvable:$true] %s102_s13 }
   0xa   :  { %v84_v20 = vadd.s32 8, %v83_v19  ;;  %vm87_vm2 = vcmp.eq.s32.totalorder %v83_v19, %v86_v21 }
   0xb   :  { %118 = vmatpush.xpose.msk.msra.mxu0 %vm27_vm0, %v25_v1  ;;  %124 = vmatpush.xpose.msk.msra.mxu1 %vm27_vm0, %v25_v1  ;;  %v121_v23 = vsel %vm87_vm2, 1.0, %v193_v22 }
   0xc   :  { %vm88_vm3 = vcmp.eq.s32.totalorder %v84_v20, %v86_v21  ;;  %93 = vst.msk [vmem:[#allocation5] sm:$0xff] %vm59_vm1, %v121_v23 }
   0xd   :  { %v122_v24 = vsel %vm88_vm3, 1.0, %v193_v22 }
   0xe   :  { %119 = vmatmul.msk.f32.vlgmr.msra.gmra.mxu0 %vm27_vm0, %v25_v1  ;;  %120 = vmatmul.msk.f32.vlgmr.msra.gmra.mxu1 %vm27_vm0, %v26_v0  ;;  %94 = vst.msk [vmem:[#allocation5 + $0x8] sm:$0xff] %vm59_vm1, %v122_v24 }
  0x8b   :  { %v51_v2 = vpop.f32.mrf.mxu0  ;;  %v54_v4 = vpop.f32.mrf.mxu1 }
  0x8c   :  { %v57_v3 = vmax.f32 %v51_v2, 0.0  ;;  %v58_v6 = vmax.f32 %v54_v4, 0.0 }
  0x8e   :  { %v60_v5 = vsel %vm59_vm1, %v57_v3, -inf  ;;  %v63_v7 = vsel %vm59_vm1, %v58_v6, -inf }
  0x8f   :  { %61 = vmax.xlane.f32.xlu0 %v60_v5 }
  0x97   :  { %64 = vmax.xlane.f32.xlu0 %v63_v7 }
 0x102   :  { %v62_v8 = vpop.xlane.xlu0 %61 }
 0x103   :  { %v66_v9 = vsub.f32 %v57_v3, %v62_v8 }
 0x105   :  { %v68_v10 = vmul.f32 1.442695, %v66_v9 }
 0x107   :  { %130 = vpow2.f32 %v68_v10 }
 0x10a   :  { %v65_v11 = vpop.xlane.xlu0 %64 }
 0x10b   :  { %v67_v12 = vsub.f32 %v58_v6, %v65_v11 }
 0x10d   :  { %v131_v13 = vpop.eup %130  ;;  %v70_v14 = vmul.f32 1.442695, %v67_v12 }
 0x10e   :  { %v72_v15 = vsel %vm59_vm1, %v131_v13, 0.0 }
 0x10f   :  { %132 = vpow2.f32 %v70_v14  ;;  %73 = vadd.xlane.f32.xlu1 %v72_v15 }
 0x115   :  { %v133_v16 = vpop.eup %132 }
 0x116   :  { %v75_v17 = vsel %vm59_vm1, %v133_v16, 0.0 }
 0x117   :  { %76 = vadd.xlane.f32.xlu1 %v75_v17 }
 0x182   :  { %v74_v25 = vpop.xlane.xlu1 %73 }
 0x183   :  { %134 = vrcp.f32 %v74_v25 }
 0x189   :  { %v135_v26 = vpop.eup %134 }
 0x18a   :  { %v80_v27 = vmul.f32 %v135_v26, %v131_v13  ;;  %v77_v28 = vpop.xlane.xlu1 %76 }
 0x18b   :  { %136 = vrcp.f32 %v77_v28 }
 0x18c   :  { %96 = vst.msk [vmem:[#allocation5 + $0x10] sm:$0xff] %vm59_vm1, %v80_v27 }
 0x191   :  { %v137_v29 = vpop.eup %136 }
 0x192   :  { %v81_v30 = vmul.f32 %v137_v29, %v133_v16 }
 0x194   :  { %97 = vst.msk [vmem:[#allocation5 + $0x18] sm:$0xff] %vm59_vm1, %v81_v30 }
 0x195   :  { %110 = dma.vmem_to_hbm [thread:$0]  %s103_s13, 512, %s105_s16, [#allocation4], %s191_s11, %s191_s11, %s192_s12  }
 0x196   :  { %188 = dma.done.wait [#allocation4], 512  }
 0x197   :  { %189 = vsyncadd [#allocation4], 4294966784 }
 0x198   :  { %115 = vsyncpa [#allocation3], 1 }
 0x199   :  { %116 = vsyncpa [#allocation4], 1 }

</bundles_post_ra>
